<compile_context>
chip_gen: v7x
topology: tpu7x:2x2x1
jax: 0.10.0
libtpu: 0.0.40
codegen_flags: <defaults>
</compile_context>

<pallas_src>
import functools
import math

import jax
import jax.numpy as jnp
from jax import lax
from jax.experimental import pallas as pl
from jax.experimental.pallas import tpu as pltpu


# ----------------------------- Pallas kernels -----------------------------

def _encoder_layer_kernel(x_ref, bias_ref,
                          wqkv_ref, bqkv_ref, wo_ref, bo_ref,
                          ln1g_ref, ln1b_ref,
                          w1_ref, b1_ref, w2_ref, b2_ref,
                          ln2g_ref, ln2b_ref,
                          o_ref, *, n_head, eps):
    """One full encoder layer for one batch element.

    x: (S, D) f32, bias: (1, S) additive attention bias (0 keep / -1e4 pad).
    """
    S, D = x_ref.shape
    Dh = D // n_head
    scale = 1.0 / math.sqrt(Dh)

    x = x_ref[...]                                           # (S, D) f32
    bias = bias_ref[...]                                     # (1, S) f32

    # ---- fused QKV projection: single (D, 3D) bf16 matmul, f32 accumulate --
    qkv = jnp.dot(x.astype(jnp.bfloat16), wqkv_ref[...],
                  preferred_element_type=jnp.float32) + bqkv_ref[...]   # (S,3D)

    wo = wo_ref[...]                                         # (D, D) f32

    # ---- multi-head attention: all heads in this grid step -----------------
    # Per-head context is folded directly into the output projection, so no
    # head concat / transpose is needed.
    attn_proj = jnp.zeros((S, D), jnp.float32)
    for h in range(n_head):
        qh = qkv[:, h * Dh:(h + 1) * Dh]                     # (S, Dh)
        kh = qkv[:, D + h * Dh:D + (h + 1) * Dh]             # (S, Dh)
        vh = qkv[:, 2 * D + h * Dh:2 * D + (h + 1) * Dh]     # (S, Dh)
        # contract on the last axis of both operands (no materialized k.T)
        s = lax.dot_general(qh, kh, (((1,), (1,)), ((), ())),
                            preferred_element_type=jnp.float32) * scale
        s = s + bias                                         # (1,S) -> (S,S)
        s = s - jnp.max(s, axis=-1, keepdims=True)
        p = jnp.exp(s)
        p = p * pl.reciprocal(jnp.sum(p, axis=-1, keepdims=True), approx=True)
        ctx = jnp.dot(p, vh, preferred_element_type=jnp.float32)      # (S, Dh)
        attn_proj = attn_proj + jnp.dot(ctx, wo[h * Dh:(h + 1) * Dh, :],
                                        preferred_element_type=jnp.float32)
    attn_proj = attn_proj + bo_ref[...]

    # ---- add & LayerNorm 1 --------------------------------------------------
    h1 = attn_proj + x
    mean = jnp.mean(h1, axis=-1, keepdims=True)
    var = jnp.mean((h1 - mean) * (h1 - mean), axis=-1, keepdims=True)
    h1 = (h1 - mean) * lax.rsqrt(var + eps) * ln1g_ref[...] + ln1b_ref[...]

    # ---- FFN: w1 -> ReLU -> w2 (hidden never leaves VMEM) -------------------
    f = jnp.dot(h1.astype(jnp.bfloat16), w1_ref[...],
                preferred_element_type=jnp.float32) + b1_ref[...]
    f = jnp.maximum(f, 0.0)
    f = jnp.dot(f.astype(jnp.bfloat16), w2_ref[...],
                preferred_element_type=jnp.float32) + b2_ref[...]

    # ---- add & LayerNorm 2 --------------------------------------------------
    h2 = f + h1
    mean2 = jnp.mean(h2, axis=-1, keepdims=True)
    var2 = jnp.mean((h2 - mean2) * (h2 - mean2), axis=-1, keepdims=True)
    o_ref[...] = (h2 - mean2) * lax.rsqrt(var2 + eps) * ln2g_ref[...] + ln2b_ref[...]


def _head_kernel(x_ref, pw_ref, pb_ref, cw_ref, cb_ref, logits_ref, emb_ref):
    """CLS rows only: low-dim projection + classifier, fused."""
    emb = jnp.dot(x_ref[...].astype(jnp.bfloat16), pw_ref[...],
                  preferred_element_type=jnp.float32) + pb_ref[...]
    emb_ref[...] = emb
    logits_ref[...] = jnp.dot(emb.astype(jnp.bfloat16), cw_ref[...],
                              preferred_element_type=jnp.float32) + cb_ref[...]


# ----------------------------- wrappers -----------------------------------

def encoder_layer(p, x, bias, *, n_head, eps=1e-12):
    """x: (B, S, D) f32, bias: (B, 1, S) f32 additive attention bias."""
    B, S, D = x.shape
    F = p["w1"].shape[1]

    def full(shape):
        return pl.BlockSpec(shape, lambda b: (0,) * len(shape))

    return pl.pallas_call(
        functools.partial(_encoder_layer_kernel, n_head=n_head, eps=eps),
        out_shape=jax.ShapeDtypeStruct((B, S, D), jnp.float32),
        grid=(B,),
        in_specs=[
            pl.BlockSpec((None, S, D), lambda b: (b, 0, 0)),   # x
            pl.BlockSpec((None, 1, S), lambda b: (b, 0, 0)),   # attention bias
            full((D, 3 * D)), full((1, 3 * D)),                # wqkv, bqkv
            full((D, D)), full((1, D)),                        # wo, bo
            full((1, D)), full((1, D)),                        # ln1 gamma/beta
            full((D, F)), full((1, F)),                        # w1, b1
            full((F, D)), full((1, D)),                        # w2, b2
            full((1, D)), full((1, D)),                        # ln2 gamma/beta
        ],
        out_specs=pl.BlockSpec((None, S, D), lambda b: (b, 0, 0)),
        compiler_params=pltpu.CompilerParams(
            dimension_semantics=("parallel",)),
    )(x, bias,
      p["wqkv"], p["bqkv"], p["wo"], p["bo"],
      p["ln1_g"], p["ln1_b"],
      p["w1"], p["b1"], p["w2"], p["b2"],
      p["ln2_g"], p["ln2_b"])


def classify_head(cls_x, proj_w, proj_b, cls_w, cls_b):
    """cls_x: (B, D) -> (logits (B, n_class), emb (B, low_dim))."""
    B, _ = cls_x.shape
    low_dim = proj_w.shape[1]
    n_class = cls_w.shape[1]
    vmem = pl.BlockSpec(memory_space=pltpu.MemorySpace.VMEM)
    return pl.pallas_call(
        _head_kernel,
        out_shape=(jax.ShapeDtypeStruct((B, n_class), jnp.float32),
                   jax.ShapeDtypeStruct((B, low_dim), jnp.float32)),
        in_specs=[vmem] * 5,
        out_specs=(vmem, vmem),
    )(cls_x, proj_w, proj_b, cls_w, cls_b)


# ----------------------------- model glue ----------------------------------

def sinusoidal_pos_encoding(max_len, d_model):
    pos = jnp.arange(max_len, dtype=jnp.float32)[:, None]
    i = jnp.arange(0, d_model, 2, dtype=jnp.float32)[None, :]
    angle = pos / jnp.power(10000.0, i / d_model)
    pe = jnp.zeros((max_len, d_model), dtype=jnp.float32)
    pe = pe.at[:, 0::2].set(jnp.sin(angle))
    pe = pe.at[:, 1::2].set(jnp.cos(angle))
    return pe


def init_params(key, enc_voc_size, n_class, d_model, n_head, max_len,
                ffn_hidden, n_layers, low_dim):
    ks = jax.random.split(key, 3 + n_layers)
    std = 0.02

    def w(k, shape, dtype=jnp.bfloat16):
        return (jax.random.normal(k, shape, dtype=jnp.float32) * std).astype(dtype)

    params = {
        "tok_emb": w(ks[0], (enc_voc_size, d_model), jnp.float32),
        "pos_enc": sinusoidal_pos_encoding(max_len, d_model),
        "proj_w": w(ks[1], (d_model, low_dim)),                 # bf16
        "proj_b": jnp.zeros((1, low_dim), jnp.float32),
        "cls_w": w(ks[2], (low_dim, n_class)),                  # bf16
        "cls_b": jnp.zeros((1, n_class), jnp.float32),
        "layers": [],
    }
    for li in range(n_layers):
        lk = jax.random.split(ks[3 + li], 6)
        wq = w(lk[0], (d_model, d_model))
        wk = w(lk[1], (d_model, d_model))
        wv = w(lk[2], (d_model, d_model))
        params["layers"].append({
            "wqkv": jnp.concatenate([wq, wk, wv], axis=1),      # (D, 3D) bf16
            "bqkv": jnp.zeros((1, 3 * d_model), jnp.float32),
            "wo": w(lk[3], (d_model, d_model), jnp.float32),    # f32 (sliced per head)
            "bo": jnp.zeros((1, d_model), jnp.float32),
            "ln1_g": jnp.ones((1, d_model), jnp.float32),
            "ln1_b": jnp.zeros((1, d_model), jnp.float32),
            "w1": w(lk[4], (d_model, ffn_hidden)),              # bf16
            "b1": jnp.zeros((1, ffn_hidden), jnp.float32),
            "w2": w(lk[5], (ffn_hidden, d_model)),              # bf16
            "b2": jnp.zeros((1, d_model), jnp.float32),
            "ln2_g": jnp.ones((1, d_model), jnp.float32),
            "ln2_b": jnp.zeros((1, d_model), jnp.float32),
        })
    return params


def classify_forward(params, src, src_mask, *, n_head):
    """src: (B, S) int32; src_mask: (B, 1, 1, S) {0,1}. Returns (logits, cls_emb)."""
    B, S = src.shape

    # embedding gather + positional encoding -- glue in plain JAX
    x = params["tok_emb"][src] + params["pos_enc"][:S][None, :, :]   # (B, S, D)

    # additive attention bias: 0 where keep, -1e4 where pad; (B, 1, S)
    bias = (src_mask.astype(jnp.float32).reshape(B, 1, S) - 1.0) * 10000.0

    for layer_p in params["layers"]:
        x = encoder_layer(layer_p, x, bias, n_head=n_head)

    # only the CLS row is consumed downstream -> project just that row
    # TODO(synk): for large S/D, tile the encoder-layer grid over sequence rows
    # and stream K/V flash-style instead of whole-(S,S) scores per batch element.
    logits, cls_emb = classify_head(x[:, 0, :], params["proj_w"], params["proj_b"],
                                    params["cls_w"], params["cls_b"])
    return logits, cls_emb


# ----------------------------- main -----------------------------------------

if __name__ == "__main__":
    # small, shape-consistent config
    B = 2
    enc_voc_size = 50
    n_class = 4
    d_model = 32
    n_head = 4
    max_len = 8          # seq length S == max_len
    ffn_hidden = 64
    n_layers = 2
    low_dim = 16
    pad_idx = 1

    key = jax.random.PRNGKey(0)
    pkey, skey = jax.random.split(key)

    params = init_params(pkey, enc_voc_size, n_class, d_model, n_head,
                         max_len, ffn_hidden, n_layers, low_dim)

    src = jax.random.randint(skey, (B, max_len), 2, enc_voc_size, dtype=jnp.int32)
    src = src.at[:, -2:].set(pad_idx)                       # some padding
    src_mask = (src != pad_idx).astype(jnp.int32).reshape(B, 1, 1, max_len)

    fwd = jax.jit(functools.partial(classify_forward, n_head=n_head))
    logits, embedding = fwd(params, src, src_mask)
    jax.block_until_ready((logits, embedding))

    assert logits.shape == (B, n_class)
    assert embedding.shape == (B, low_dim)
    assert bool(jnp.all(jnp.isfinite(logits))) and bool(jnp.all(jnp.isfinite(embedding)))
    print("KERNEL_OK")
</pallas_src>

<mosaic_0001>
module attributes {stable_mosaic.version = 11 : i64} {
  func.func @_encoder_layer_kernel(%arg0: i32, %arg1: memref<1x8x32xf32, #tpu.memory_space<vmem>>, %arg2: memref<1x1x8xf32, #tpu.memory_space<vmem>>, %arg3: memref<32x96xbf16, #tpu.memory_space<vmem>>, %arg4: memref<1x96xf32, #tpu.memory_space<vmem>>, %arg5: memref<32x32xf32, #tpu.memory_space<vmem>>, %arg6: memref<1x32xf32, #tpu.memory_space<vmem>>, %arg7: memref<1x32xf32, #tpu.memory_space<vmem>>, %arg8: memref<1x32xf32, #tpu.memory_space<vmem>>, %arg9: memref<32x64xbf16, #tpu.memory_space<vmem>>, %arg10: memref<1x64xf32, #tpu.memory_space<vmem>>, %arg11: memref<64x32xbf16, #tpu.memory_space<vmem>>, %arg12: memref<1x32xf32, #tpu.memory_space<vmem>>, %arg13: memref<1x32xf32, #tpu.memory_space<vmem>>, %arg14: memref<1x32xf32, #tpu.memory_space<vmem>>, %arg15: memref<1x8x32xf32, #tpu.memory_space<vmem>>) attributes {dimension_semantics = [#tpu.dimension_semantics<parallel>], iteration_bounds = array<i64: 2>, scalar_prefetch = 0 : i64, scratch_operands = 0 : i64, tpu.core_type = #tpu.core_type<tc>, window_params = [{transform_indices = @transform_0, window_bounds = array<i64: 1, 8, 32>}, {transform_indices = @transform_1, window_bounds = array<i64: 1, 1, 8>}, {pipeline_mode = #tpu.pipeline_mode<synchronous>, transform_indices = @transform_2, window_bounds = array<i64: 32, 96>}, {pipeline_mode = #tpu.pipeline_mode<synchronous>, transform_indices = @transform_3, window_bounds = array<i64: 1, 96>}, {pipeline_mode = #tpu.pipeline_mode<synchronous>, transform_indices = @transform_4, window_bounds = array<i64: 32, 32>}, {pipeline_mode = #tpu.pipeline_mode<synchronous>, transform_indices = @transform_5, window_bounds = array<i64: 1, 32>}, {pipeline_mode = #tpu.pipeline_mode<synchronous>, transform_indices = @transform_6, window_bounds = array<i64: 1, 32>}, {pipeline_mode = #tpu.pipeline_mode<synchronous>, transform_indices = @transform_7, window_bounds = array<i64: 1, 32>}, {pipeline_mode = #tpu.pipeline_mode<synchronous>, transform_indices = @transform_8, window_bounds = array<i64: 32, 64>}, {pipeline_mode = #tpu.pipeline_mode<synchronous>, transform_indices = @transform_9, window_bounds = array<i64: 1, 64>}, {pipeline_mode = #tpu.pipeline_mode<synchronous>, transform_indices = @transform_10, window_bounds = array<i64: 64, 32>}, {pipeline_mode = #tpu.pipeline_mode<synchronous>, transform_indices = @transform_11, window_bounds = array<i64: 1, 32>}, {pipeline_mode = #tpu.pipeline_mode<synchronous>, transform_indices = @transform_12, window_bounds = array<i64: 1, 32>}, {pipeline_mode = #tpu.pipeline_mode<synchronous>, transform_indices = @transform_13, window_bounds = array<i64: 1, 32>}, {transform_indices = @transform_14, window_bounds = array<i64: 1, 8, 32>}]} {
    %c0 = arith.constant 0 : index
    %c0_0 = arith.constant 0 : index
    %c0_1 = arith.constant 0 : index
    %0 = vector.load %arg1[%c0, %c0_0, %c0_1] : memref<1x8x32xf32, #tpu.memory_space<vmem>>, vector<1x8x32xf32>
    %1 = vector.shape_cast %0 : vector<1x8x32xf32> to vector<8x32xf32>
    %c0_2 = arith.constant 0 : index
    %c0_3 = arith.constant 0 : index
    %c0_4 = arith.constant 0 : index
    %2 = vector.load %arg2[%c0_2, %c0_3, %c0_4] : memref<1x1x8xf32, #tpu.memory_space<vmem>>, vector<1x1x8xf32>
    %3 = vector.shape_cast %2 : vector<1x1x8xf32> to vector<1x8xf32>
    %4 = arith.truncf %1 : vector<8x32xf32> to vector<8x32xbf16>
    %c0_5 = arith.constant 0 : index
    %c0_6 = arith.constant 0 : index
    %5 = vector.load %arg3[%c0_5, %c0_6] : memref<32x96xbf16, #tpu.memory_space<vmem>>, vector<32x96xbf16>
    %cst = arith.constant dense<0.000000e+00> : vector<8x96xf32>
    %6 = tpu.matmul %4, %5, %cst {dimension_numbers = #tpu.dot_dimension_numbers<[1], [0], [0], [1], [0, 0, 1, 1], [], []>} : vector<8x32xbf16>, vector<32x96xbf16>, vector<8x96xf32> -> vector<8x96xf32>
    %c0_7 = arith.constant 0 : index
    %c0_8 = arith.constant 0 : index
    %7 = vector.load %arg4[%c0_7, %c0_8] : memref<1x96xf32, #tpu.memory_space<vmem>>, vector<1x96xf32>
    %8 = vector.broadcast %7 : vector<1x96xf32> to vector<8x96xf32>
    %9 = arith.addf %6, %8 : vector<8x96xf32>
    %c0_9 = arith.constant 0 : index
    %c0_10 = arith.constant 0 : index
    %10 = vector.load %arg5[%c0_9, %c0_10] : memref<32x32xf32, #tpu.memory_space<vmem>>, vector<32x32xf32>
    %cst_11 = arith.constant 0.000000e+00 : f32
    %11 = vector.broadcast %cst_11 : f32 to vector<8x32xf32>
    %12 = vector.extract_strided_slice %9 {offsets = [0, 0], sizes = [8, 8], strides = [1, 1]} : vector<8x96xf32> to vector<8x8xf32>
    %13 = vector.extract_strided_slice %9 {offsets = [0, 32], sizes = [8, 8], strides = [1, 1]} : vector<8x96xf32> to vector<8x8xf32>
    %14 = vector.extract_strided_slice %9 {offsets = [0, 64], sizes = [8, 8], strides = [1, 1]} : vector<8x96xf32> to vector<8x8xf32>
    %cst_12 = arith.constant dense<0.000000e+00> : vector<8x8xf32>
    %15 = tpu.matmul %12, %13, %cst_12 {dimension_numbers = #tpu.dot_dimension_numbers<[1], [1], [0], [0], [0, 0, 1, 0], [], []>} : vector<8x8xf32>, vector<8x8xf32>, vector<8x8xf32> -> vector<8x8xf32>
    %cst_13 = arith.constant 0.353553385 : f32
    %16 = vector.broadcast %cst_13 : f32 to vector<8x8xf32>
    %17 = arith.mulf %15, %16 : vector<8x8xf32>
    %18 = vector.broadcast %3 : vector<1x8xf32> to vector<8x8xf32>
    %19 = arith.addf %17, %18 : vector<8x8xf32>
    %cst_14 = arith.constant dense<0xFF800000> : vector<8xf32>
    %20 = vector.multi_reduction <maximumf>, %19, %cst_14 [1] : vector<8x8xf32> to vector<8xf32>
    %21 = vector.shape_cast %20 : vector<8xf32> to vector<8x1xf32>
    %22 = vector.broadcast %21 : vector<8x1xf32> to vector<8x8xf32>
    %23 = arith.subf %19, %22 : vector<8x8xf32>
    %24 = math.exp %23 : vector<8x8xf32>
    %cst_15 = arith.constant dense<0.000000e+00> : vector<8xf32>
    %25 = vector.multi_reduction <add>, %24, %cst_15 [1] : vector<8x8xf32> to vector<8xf32>
    %26 = vector.shape_cast %25 : vector<8xf32> to vector<8x1xf32>
    %27 = tpu.reciprocal %26 {approx = true} : vector<8x1xf32> -> vector<8x1xf32>
    %28 = vector.broadcast %27 : vector<8x1xf32> to vector<8x8xf32>
    %29 = arith.mulf %24, %28 : vector<8x8xf32>
    %cst_16 = arith.constant dense<0.000000e+00> : vector<8x8xf32>
    %30 = tpu.matmul %29, %14, %cst_16 {dimension_numbers = #tpu.dot_dimension_numbers<[1], [0], [0], [1], [0, 0, 1, 1], [], []>} : vector<8x8xf32>, vector<8x8xf32>, vector<8x8xf32> -> vector<8x8xf32>
    %31 = vector.extract_strided_slice %10 {offsets = [0, 0], sizes = [8, 32], strides = [1, 1]} : vector<32x32xf32> to vector<8x32xf32>
    %cst_17 = arith.constant dense<0.000000e+00> : vector<8x32xf32>
    %32 = tpu.matmul %30, %31, %cst_17 {dimension_numbers = #tpu.dot_dimension_numbers<[1], [0], [0], [1], [0, 0, 1, 1], [], []>} : vector<8x8xf32>, vector<8x32xf32>, vector<8x32xf32> -> vector<8x32xf32>
    %33 = arith.addf %11, %32 : vector<8x32xf32>
    %34 = vector.extract_strided_slice %9 {offsets = [0, 8], sizes = [8, 8], strides = [1, 1]} : vector<8x96xf32> to vector<8x8xf32>
    %35 = vector.extract_strided_slice %9 {offsets = [0, 40], sizes = [8, 8], strides = [1, 1]} : vector<8x96xf32> to vector<8x8xf32>
    %36 = vector.extract_strided_slice %9 {offsets = [0, 72], sizes = [8, 8], strides = [1, 1]} : vector<8x96xf32> to vector<8x8xf32>
    %cst_18 = arith.constant dense<0.000000e+00> : vector<8x8xf32>
    %37 = tpu.matmul %34, %35, %cst_18 {dimension_numbers = #tpu.dot_dimension_numbers<[1], [1], [0], [0], [0, 0, 1, 0], [], []>} : vector<8x8xf32>, vector<8x8xf32>, vector<8x8xf32> -> vector<8x8xf32>
    %cst_19 = arith.constant 0.353553385 : f32
    %38 = vector.broadcast %cst_19 : f32 to vector<8x8xf32>
    %39 = arith.mulf %37, %38 : vector<8x8xf32>
    %40 = vector.broadcast %3 : vector<1x8xf32> to vector<8x8xf32>
    %41 = arith.addf %39, %40 : vector<8x8xf32>
    %cst_20 = arith.constant dense<0xFF800000> : vector<8xf32>
    %42 = vector.multi_reduction <maximumf>, %41, %cst_20 [1] : vector<8x8xf32> to vector<8xf32>
    %43 = vector.shape_cast %42 : vector<8xf32> to vector<8x1xf32>
    %44 = vector.broadcast %43 : vector<8x1xf32> to vector<8x8xf32>
    %45 = arith.subf %41, %44 : vector<8x8xf32>
    %46 = math.exp %45 : vector<8x8xf32>
    %cst_21 = arith.constant dense<0.000000e+00> : vector<8xf32>
    %47 = vector.multi_reduction <add>, %46, %cst_21 [1] : vector<8x8xf32> to vector<8xf32>
    %48 = vector.shape_cast %47 : vector<8xf32> to vector<8x1xf32>
    %49 = tpu.reciprocal %48 {approx = true} : vector<8x1xf32> -> vector<8x1xf32>
    %50 = vector.broadcast %49 : vector<8x1xf32> to vector<8x8xf32>
    %51 = arith.mulf %46, %50 : vector<8x8xf32>
    %cst_22 = arith.constant dense<0.000000e+00> : vector<8x8xf32>
    %52 = tpu.matmul %51, %36, %cst_22 {dimension_numbers = #tpu.dot_dimension_numbers<[1], [0], [0], [1], [0, 0, 1, 1], [], []>} : vector<8x8xf32>, vector<8x8xf32>, vector<8x8xf32> -> vector<8x8xf32>
    %53 = vector.extract_strided_slice %10 {offsets = [8, 0], sizes = [8, 32], strides = [1, 1]} : vector<32x32xf32> to vector<8x32xf32>
    %cst_23 = arith.constant dense<0.000000e+00> : vector<8x32xf32>
    %54 = tpu.matmul %52, %53, %cst_23 {dimension_numbers = #tpu.dot_dimension_numbers<[1], [0], [0], [1], [0, 0, 1, 1], [], []>} : vector<8x8xf32>, vector<8x32xf32>, vector<8x32xf32> -> vector<8x32xf32>
    %55 = arith.addf %33, %54 : vector<8x32xf32>
    %56 = vector.extract_strided_slice %9 {offsets = [0, 16], sizes = [8, 8], strides = [1, 1]} : vector<8x96xf32> to vector<8x8xf32>
    %57 = vector.extract_strided_slice %9 {offsets = [0, 48], sizes = [8, 8], strides = [1, 1]} : vector<8x96xf32> to vector<8x8xf32>
    %58 = vector.extract_strided_slice %9 {offsets = [0, 80], sizes = [8, 8], strides = [1, 1]} : vector<8x96xf32> to vector<8x8xf32>
    %cst_24 = arith.constant dense<0.000000e+00> : vector<8x8xf32>
    %59 = tpu.matmul %56, %57, %cst_24 {dimension_numbers = #tpu.dot_dimension_numbers<[1], [1], [0], [0], [0, 0, 1, 0], [], []>} : vector<8x8xf32>, vector<8x8xf32>, vector<8x8xf32> -> vector<8x8xf32>
    %cst_25 = arith.constant 0.353553385 : f32
    %60 = vector.broadcast %cst_25 : f32 to vector<8x8xf32>
    %61 = arith.mulf %59, %60 : vector<8x8xf32>
    %62 = vector.broadcast %3 : vector<1x8xf32> to vector<8x8xf32>
    %63 = arith.addf %61, %62 : vector<8x8xf32>
    %cst_26 = arith.constant dense<0xFF800000> : vector<8xf32>
    %64 = vector.multi_reduction <maximumf>, %63, %cst_26 [1] : vector<8x8xf32> to vector<8xf32>
    %65 = vector.shape_cast %64 : vector<8xf32> to vector<8x1xf32>
    %66 = vector.broadcast %65 : vector<8x1xf32> to vector<8x8xf32>
    %67 = arith.subf %63, %66 : vector<8x8xf32>
    %68 = math.exp %67 : vector<8x8xf32>
    %cst_27 = arith.constant dense<0.000000e+00> : vector<8xf32>
    %69 = vector.multi_reduction <add>, %68, %cst_27 [1] : vector<8x8xf32> to vector<8xf32>
    %70 = vector.shape_cast %69 : vector<8xf32> to vector<8x1xf32>
    %71 = tpu.reciprocal %70 {approx = true} : vector<8x1xf32> -> vector<8x1xf32>
    %72 = vector.broadcast %71 : vector<8x1xf32> to vector<8x8xf32>
    %73 = arith.mulf %68, %72 : vector<8x8xf32>
    %cst_28 = arith.constant dense<0.000000e+00> : vector<8x8xf32>
    %74 = tpu.matmul %73, %58, %cst_28 {dimension_numbers = #tpu.dot_dimension_numbers<[1], [0], [0], [1], [0, 0, 1, 1], [], []>} : vector<8x8xf32>, vector<8x8xf32>, vector<8x8xf32> -> vector<8x8xf32>
    %75 = vector.extract_strided_slice %10 {offsets = [16, 0], sizes = [8, 32], strides = [1, 1]} : vector<32x32xf32> to vector<8x32xf32>
    %cst_29 = arith.constant dense<0.000000e+00> : vector<8x32xf32>
    %76 = tpu.matmul %74, %75, %cst_29 {dimension_numbers = #tpu.dot_dimension_numbers<[1], [0], [0], [1], [0, 0, 1, 1], [], []>} : vector<8x8xf32>, vector<8x32xf32>, vector<8x32xf32> -> vector<8x32xf32>
    %77 = arith.addf %55, %76 : vector<8x32xf32>
    %78 = vector.extract_strided_slice %9 {offsets = [0, 24], sizes = [8, 8], strides = [1, 1]} : vector<8x96xf32> to vector<8x8xf32>
    %79 = vector.extract_strided_slice %9 {offsets = [0, 56], sizes = [8, 8], strides = [1, 1]} : vector<8x96xf32> to vector<8x8xf32>
    %80 = vector.extract_strided_slice %9 {offsets = [0, 88], sizes = [8, 8], strides = [1, 1]} : vector<8x96xf32> to vector<8x8xf32>
    %cst_30 = arith.constant dense<0.000000e+00> : vector<8x8xf32>
    %81 = tpu.matmul %78, %79, %cst_30 {dimension_numbers = #tpu.dot_dimension_numbers<[1], [1], [0], [0], [0, 0, 1, 0], [], []>} : vector<8x8xf32>, vector<8x8xf32>, vector<8x8xf32> -> vector<8x8xf32>
    %cst_31 = arith.constant 0.353553385 : f32
    %82 = vector.broadcast %cst_31 : f32 to vector<8x8xf32>
    %83 = arith.mulf %81, %82 : vector<8x8xf32>
    %84 = vector.broadcast %3 : vector<1x8xf32> to vector<8x8xf32>
    %85 = arith.addf %83, %84 : vector<8x8xf32>
    %cst_32 = arith.constant dense<0xFF800000> : vector<8xf32>
    %86 = vector.multi_reduction <maximumf>, %85, %cst_32 [1] : vector<8x8xf32> to vector<8xf32>
    %87 = vector.shape_cast %86 : vector<8xf32> to vector<8x1xf32>
    %88 = vector.broadcast %87 : vector<8x1xf32> to vector<8x8xf32>
    %89 = arith.subf %85, %88 : vector<8x8xf32>
    %90 = math.exp %89 : vector<8x8xf32>
    %cst_33 = arith.constant dense<0.000000e+00> : vector<8xf32>
    %91 = vector.multi_reduction <add>, %90, %cst_33 [1] : vector<8x8xf32> to vector<8xf32>
    %92 = vector.shape_cast %91 : vector<8xf32> to vector<8x1xf32>
    %93 = tpu.reciprocal %92 {approx = true} : vector<8x1xf32> -> vector<8x1xf32>
    %94 = vector.broadcast %93 : vector<8x1xf32> to vector<8x8xf32>
    %95 = arith.mulf %90, %94 : vector<8x8xf32>
    %cst_34 = arith.constant dense<0.000000e+00> : vector<8x8xf32>
    %96 = tpu.matmul %95, %80, %cst_34 {dimension_numbers = #tpu.dot_dimension_numbers<[1], [0], [0], [1], [0, 0, 1, 1], [], []>} : vector<8x8xf32>, vector<8x8xf32>, vector<8x8xf32> -> vector<8x8xf32>
    %97 = vector.extract_strided_slice %10 {offsets = [24, 0], sizes = [8, 32], strides = [1, 1]} : vector<32x32xf32> to vector<8x32xf32>
    %cst_35 = arith.constant dense<0.000000e+00> : vector<8x32xf32>
    %98 = tpu.matmul %96, %97, %cst_35 {dimension_numbers = #tpu.dot_dimension_numbers<[1], [0], [0], [1], [0, 0, 1, 1], [], []>} : vector<8x8xf32>, vector<8x32xf32>, vector<8x32xf32> -> vector<8x32xf32>
    %99 = arith.addf %77, %98 : vector<8x32xf32>
    %c0_36 = arith.constant 0 : index
    %c0_37 = arith.constant 0 : index
    %100 = vector.load %arg6[%c0_36, %c0_37] : memref<1x32xf32, #tpu.memory_space<vmem>>, vector<1x32xf32>
    %101 = vector.broadcast %100 : vector<1x32xf32> to vector<8x32xf32>
    %102 = arith.addf %99, %101 : vector<8x32xf32>
    %103 = arith.addf %102, %1 : vector<8x32xf32>
    %cst_38 = arith.constant dense<0.000000e+00> : vector<8xf32>
    %104 = vector.multi_reduction <add>, %103, %cst_38 [1] : vector<8x32xf32> to vector<8xf32>
    %105 = vector.shape_cast %104 : vector<8xf32> to vector<8x1xf32>
    %cst_39 = arith.constant 3.200000e+01 : f32
    %106 = vector.broadcast %cst_39 : f32 to vector<8x1xf32>
    %107 = arith.divf %105, %106 : vector<8x1xf32>
    %108 = vector.broadcast %107 : vector<8x1xf32> to vector<8x32xf32>
    %109 = arith.subf %103, %108 : vector<8x32xf32>
    %110 = vector.broadcast %107 : vector<8x1xf32> to vector<8x32xf32>
    %111 = arith.subf %103, %110 : vector<8x32xf32>
    %112 = arith.mulf %109, %111 : vector<8x32xf32>
    %cst_40 = arith.constant dense<0.000000e+00> : vector<8xf32>
    %113 = vector.multi_reduction <add>, %112, %cst_40 [1] : vector<8x32xf32> to vector<8xf32>
    %114 = vector.shape_cast %113 : vector<8xf32> to vector<8x1xf32>
    %cst_41 = arith.constant 3.200000e+01 : f32
    %115 = vector.broadcast %cst_41 : f32 to vector<8x1xf32>
    %116 = arith.divf %114, %115 : vector<8x1xf32>
    %117 = vector.broadcast %107 : vector<8x1xf32> to vector<8x32xf32>
    %118 = arith.subf %103, %117 : vector<8x32xf32>
    %cst_42 = arith.constant 9.99999996E-13 : f32
    %119 = vector.broadcast %cst_42 : f32 to vector<8x1xf32>
    %120 = arith.addf %116, %119 : vector<8x1xf32>
    %121 = math.rsqrt %120 : vector<8x1xf32>
    %122 = vector.broadcast %121 : vector<8x1xf32> to vector<8x32xf32>
    %123 = arith.mulf %118, %122 : vector<8x32xf32>
    %c0_43 = arith.constant 0 : index
    %c0_44 = arith.constant 0 : index
    %124 = vector.load %arg7[%c0_43, %c0_44] : memref<1x32xf32, #tpu.memory_space<vmem>>, vector<1x32xf32>
    %125 = vector.broadcast %124 : vector<1x32xf32> to vector<8x32xf32>
    %126 = arith.mulf %123, %125 : vector<8x32xf32>
    %c0_45 = arith.constant 0 : index
    %c0_46 = arith.constant 0 : index
    %127 = vector.load %arg8[%c0_45, %c0_46] : memref<1x32xf32, #tpu.memory_space<vmem>>, vector<1x32xf32>
    %128 = vector.broadcast %127 : vector<1x32xf32> to vector<8x32xf32>
    %129 = arith.addf %126, %128 : vector<8x32xf32>
    %130 = arith.truncf %129 : vector<8x32xf32> to vector<8x32xbf16>
    %c0_47 = arith.constant 0 : index
    %c0_48 = arith.constant 0 : index
    %131 = vector.load %arg9[%c0_47, %c0_48] : memref<32x64xbf16, #tpu.memory_space<vmem>>, vector<32x64xbf16>
    %cst_49 = arith.constant dense<0.000000e+00> : vector<8x64xf32>
    %132 = tpu.matmul %130, %131, %cst_49 {dimension_numbers = #tpu.dot_dimension_numbers<[1], [0], [0], [1], [0, 0, 1, 1], [], []>} : vector<8x32xbf16>, vector<32x64xbf16>, vector<8x64xf32> -> vector<8x64xf32>
    %c0_50 = arith.constant 0 : index
    %c0_51 = arith.constant 0 : index
    %133 = vector.load %arg10[%c0_50, %c0_51] : memref<1x64xf32, #tpu.memory_space<vmem>>, vector<1x64xf32>
    %134 = vector.broadcast %133 : vector<1x64xf32> to vector<8x64xf32>
    %135 = arith.addf %132, %134 : vector<8x64xf32>
    %cst_52 = arith.constant 0.000000e+00 : f32
    %136 = vector.broadcast %cst_52 : f32 to vector<8x64xf32>
    %137 = arith.maximumf %135, %136 : vector<8x64xf32>
    %138 = arith.truncf %137 : vector<8x64xf32> to vector<8x64xbf16>
    %c0_53 = arith.constant 0 : index
    %c0_54 = arith.constant 0 : index
    %139 = vector.load %arg11[%c0_53, %c0_54] : memref<64x32xbf16, #tpu.memory_space<vmem>>, vector<64x32xbf16>
    %cst_55 = arith.constant dense<0.000000e+00> : vector<8x32xf32>
    %140 = tpu.matmul %138, %139, %cst_55 {dimension_numbers = #tpu.dot_dimension_numbers<[1], [0], [0], [1], [0, 0, 1, 1], [], []>} : vector<8x64xbf16>, vector<64x32xbf16>, vector<8x32xf32> -> vector<8x32xf32>
    %c0_56 = arith.constant 0 : index
    %c0_57 = arith.constant 0 : index
    %141 = vector.load %arg12[%c0_56, %c0_57] : memref<1x32xf32, #tpu.memory_space<vmem>>, vector<1x32xf32>
    %142 = vector.broadcast %141 : vector<1x32xf32> to vector<8x32xf32>
    %143 = arith.addf %140, %142 : vector<8x32xf32>
    %144 = arith.addf %143, %129 : vector<8x32xf32>
    %cst_58 = arith.constant dense<0.000000e+00> : vector<8xf32>
    %145 = vector.multi_reduction <add>, %144, %cst_58 [1] : vector<8x32xf32> to vector<8xf32>
    %146 = vector.shape_cast %145 : vector<8xf32> to vector<8x1xf32>
    %cst_59 = arith.constant 3.200000e+01 : f32
    %147 = vector.broadcast %cst_59 : f32 to vector<8x1xf32>
    %148 = arith.divf %146, %147 : vector<8x1xf32>
    %149 = vector.broadcast %148 : vector<8x1xf32> to vector<8x32xf32>
    %150 = arith.subf %144, %149 : vector<8x32xf32>
    %151 = vector.broadcast %148 : vector<8x1xf32> to vector<8x32xf32>
    %152 = arith.subf %144, %151 : vector<8x32xf32>
    %153 = arith.mulf %150, %152 : vector<8x32xf32>
    %cst_60 = arith.constant dense<0.000000e+00> : vector<8xf32>
    %154 = vector.multi_reduction <add>, %153, %cst_60 [1] : vector<8x32xf32> to vector<8xf32>
    %155 = vector.shape_cast %154 : vector<8xf32> to vector<8x1xf32>
    %cst_61 = arith.constant 3.200000e+01 : f32
    %156 = vector.broadcast %cst_61 : f32 to vector<8x1xf32>
    %157 = arith.divf %155, %156 : vector<8x1xf32>
    %158 = vector.broadcast %148 : vector<8x1xf32> to vector<8x32xf32>
    %159 = arith.subf %144, %158 : vector<8x32xf32>
    %cst_62 = arith.constant 9.99999996E-13 : f32
    %160 = vector.broadcast %cst_62 : f32 to vector<8x1xf32>
    %161 = arith.addf %157, %160 : vector<8x1xf32>
    %162 = math.rsqrt %161 : vector<8x1xf32>
    %163 = vector.broadcast %162 : vector<8x1xf32> to vector<8x32xf32>
    %164 = arith.mulf %159, %163 : vector<8x32xf32>
    %c0_63 = arith.constant 0 : index
    %c0_64 = arith.constant 0 : index
    %165 = vector.load %arg13[%c0_63, %c0_64] : memref<1x32xf32, #tpu.memory_space<vmem>>, vector<1x32xf32>
    %166 = vector.broadcast %165 : vector<1x32xf32> to vector<8x32xf32>
    %167 = arith.mulf %164, %166 : vector<8x32xf32>
    %c0_65 = arith.constant 0 : index
    %c0_66 = arith.constant 0 : index
    %168 = vector.load %arg14[%c0_65, %c0_66] : memref<1x32xf32, #tpu.memory_space<vmem>>, vector<1x32xf32>
    %169 = vector.broadcast %168 : vector<1x32xf32> to vector<8x32xf32>
    %170 = arith.addf %167, %169 : vector<8x32xf32>
    %c0_67 = arith.constant 0 : index
    %c0_68 = arith.constant 0 : index
    %c0_69 = arith.constant 0 : index
    %171 = vector.load %arg15[%c0_67, %c0_68, %c0_69] : memref<1x8x32xf32, #tpu.memory_space<vmem>>, vector<1x8x32xf32>
    %172 = vector.shape_cast %171 : vector<1x8x32xf32> to vector<8x32xf32>
    %173 = vector.shape_cast %170 : vector<8x32xf32> to vector<1x8x32xf32>
    tpu.vector_store %arg15[%c0_67, %c0_68, %c0_69], %173 {strides = array<i32>} : memref<1x8x32xf32, #tpu.memory_space<vmem>>, vector<1x8x32xf32>,
    return
  }
  func.func @transform_0(%arg0: i32) -> (i32, i32, i32) {
    %c0_i32 = arith.constant 0 : i32
    %c0_i32_0 = arith.constant 0 : i32
    %c0_i32_1 = arith.constant 0 : i32
    return %arg0, %c0_i32, %c0_i32_0 : i32, i32, i32
  }
  func.func @transform_1(%arg0: i32) -> (i32, i32, i32) {
    %c0_i32 = arith.constant 0 : i32
    %c0_i32_0 = arith.constant 0 : i32
    %c0_i32_1 = arith.constant 0 : i32
    return %arg0, %c0_i32, %c0_i32_0 : i32, i32, i32
  }
  func.func @transform_2(%arg0: i32) -> (i32, i32) {
    %c0_i32 = arith.constant 0 : i32
    %c0_i32_0 = arith.constant 0 : i32
    %c0_i32_1 = arith.constant 0 : i32
    return %c0_i32, %c0_i32_0 : i32, i32
  }
  func.func @transform_3(%arg0: i32) -> (i32, i32) {
    %c0_i32 = arith.constant 0 : i32
    %c0_i32_0 = arith.constant 0 : i32
    %c0_i32_1 = arith.constant 0 : i32
    return %c0_i32, %c0_i32_0 : i32, i32
  }
  func.func @transform_4(%arg0: i32) -> (i32, i32) {
    %c0_i32 = arith.constant 0 : i32
    %c0_i32_0 = arith.constant 0 : i32
    %c0_i32_1 = arith.constant 0 : i32
    return %c0_i32, %c0_i32_0 : i32, i32
  }
  func.func @transform_5(%arg0: i32) -> (i32, i32) {
    %c0_i32 = arith.constant 0 : i32
    %c0_i32_0 = arith.constant 0 : i32
    %c0_i32_1 = arith.constant 0 : i32
    return %c0_i32, %c0_i32_0 : i32, i32
  }
  func.func @transform_6(%arg0: i32) -> (i32, i32) {
    %c0_i32 = arith.constant 0 : i32
    %c0_i32_0 = arith.constant 0 : i32
    %c0_i32_1 = arith.constant 0 : i32
    return %c0_i32, %c0_i32_0 : i32, i32
  }
  func.func @transform_7(%arg0: i32) -> (i32, i32) {
    %c0_i32 = arith.constant 0 : i32
    %c0_i32_0 = arith.constant 0 : i32
    %c0_i32_1 = arith.constant 0 : i32
    return %c0_i32, %c0_i32_0 : i32, i32
  }
  func.func @transform_8(%arg0: i32) -> (i32, i32) {
    %c0_i32 = arith.constant 0 : i32
    %c0_i32_0 = arith.constant 0 : i32
    %c0_i32_1 = arith.constant 0 : i32
    return %c0_i32, %c0_i32_0 : i32, i32
  }
  func.func @transform_9(%arg0: i32) -> (i32, i32) {
    %c0_i32 = arith.constant 0 : i32
    %c0_i32_0 = arith.constant 0 : i32
    %c0_i32_1 = arith.constant 0 : i32
    return %c0_i32, %c0_i32_0 : i32, i32
  }
  func.func @transform_10(%arg0: i32) -> (i32, i32) {
    %c0_i32 = arith.constant 0 : i32
    %c0_i32_0 = arith.constant 0 : i32
    %c0_i32_1 = arith.constant 0 : i32
    return %c0_i32, %c0_i32_0 : i32, i32
  }
  func.func @transform_11(%arg0: i32) -> (i32, i32) {
    %c0_i32 = arith.constant 0 : i32
    %c0_i32_0 = arith.constant 0 : i32
    %c0_i32_1 = arith.constant 0 : i32
    return %c0_i32, %c0_i32_0 : i32, i32
  }
  func.func @transform_12(%arg0: i32) -> (i32, i32) {
    %c0_i32 = arith.constant 0 : i32
    %c0_i32_0 = arith.constant 0 : i32
    %c0_i32_1 = arith.constant 0 : i32
    return %c0_i32, %c0_i32_0 : i32, i32
  }
  func.func @transform_13(%arg0: i32) -> (i32, i32) {
    %c0_i32 = arith.constant 0 : i32
    %c0_i32_0 = arith.constant 0 : i32
    %c0_i32_1 = arith.constant 0 : i32
    return %c0_i32, %c0_i32_0 : i32, i32
  }
  func.func @transform_14(%arg0: i32) -> (i32, i32, i32) {
    %c0_i32 = arith.constant 0 : i32
    %c0_i32_0 = arith.constant 0 : i32
    %c0_i32_1 = arith.constant 0 : i32
    return %arg0, %c0_i32, %c0_i32_0 : i32, i32, i32
  }
}

module attributes {stable_mosaic.version = 11 : i64} {
  func.func @_head_kernel(%arg0: memref<2x32xf32, #tpu.memory_space<vmem>>, %arg1: memref<32x16xbf16, #tpu.memory_space<vmem>>, %arg2: memref<1x16xf32, #tpu.memory_space<vmem>>, %arg3: memref<16x4xbf16, #tpu.memory_space<vmem>>, %arg4: memref<1x4xf32, #tpu.memory_space<vmem>>, %arg5: memref<2x4xf32, #tpu.memory_space<vmem>>, %arg6: memref<2x16xf32, #tpu.memory_space<vmem>>) attributes {dimension_semantics = [], scalar_prefetch = 0 : i64, scratch_operands = 0 : i64, tpu.core_type = #tpu.core_type<tc>} {
    %c0 = arith.constant 0 : index
    %c0_0 = arith.constant 0 : index
    %0 = vector.load %arg0[%c0, %c0_0] : memref<2x32xf32, #tpu.memory_space<vmem>>, vector<2x32xf32>
    %1 = arith.truncf %0 : vector<2x32xf32> to vector<2x32xbf16>
    %c0_1 = arith.constant 0 : index
    %c0_2 = arith.constant 0 : index
    %2 = vector.load %arg1[%c0_1, %c0_2] : memref<32x16xbf16, #tpu.memory_space<vmem>>, vector<32x16xbf16>
    %cst = arith.constant dense<0.000000e+00> : vector<2x16xf32>
    %3 = tpu.matmul %1, %2, %cst {dimension_numbers = #tpu.dot_dimension_numbers<[1], [0], [0], [1], [0, 0, 1, 1], [], []>} : vector<2x32xbf16>, vector<32x16xbf16>, vector<2x16xf32> -> vector<2x16xf32>
    %c0_3 = arith.constant 0 : index
    %c0_4 = arith.constant 0 : index
    %4 = vector.load %arg2[%c0_3, %c0_4] : memref<1x16xf32, #tpu.memory_space<vmem>>, vector<1x16xf32>
    %5 = vector.broadcast %4 : vector<1x16xf32> to vector<2x16xf32>
    %6 = arith.addf %3, %5 : vector<2x16xf32>
    %c0_5 = arith.constant 0 : index
    %c0_6 = arith.constant 0 : index
    %7 = vector.load %arg6[%c0_5, %c0_6] : memref<2x16xf32, #tpu.memory_space<vmem>>, vector<2x16xf32>
    tpu.vector_store %arg6[%c0_5, %c0_6], %6 {strides = array<i32>} : memref<2x16xf32, #tpu.memory_space<vmem>>, vector<2x16xf32>,
    %8 = arith.truncf %6 : vector<2x16xf32> to vector<2x16xbf16>
    %c0_7 = arith.constant 0 : index
    %c0_8 = arith.constant 0 : index
    %9 = vector.load %arg3[%c0_7, %c0_8] : memref<16x4xbf16, #tpu.memory_space<vmem>>, vector<16x4xbf16>
    %cst_9 = arith.constant dense<0.000000e+00> : vector<2x4xf32>
    %10 = tpu.matmul %8, %9, %cst_9 {dimension_numbers = #tpu.dot_dimension_numbers<[1], [0], [0], [1], [0, 0, 1, 1], [], []>} : vector<2x16xbf16>, vector<16x4xbf16>, vector<2x4xf32> -> vector<2x4xf32>
    %c0_10 = arith.constant 0 : index
    %c0_11 = arith.constant 0 : index
    %11 = vector.load %arg4[%c0_10, %c0_11] : memref<1x4xf32, #tpu.memory_space<vmem>>, vector<1x4xf32>
    %12 = vector.broadcast %11 : vector<1x4xf32> to vector<2x4xf32>
    %13 = arith.addf %10, %12 : vector<2x4xf32>
    %c0_12 = arith.constant 0 : index
    %c0_13 = arith.constant 0 : index
    %14 = vector.load %arg5[%c0_12, %c0_13] : memref<2x4xf32, #tpu.memory_space<vmem>>, vector<2x4xf32>
    tpu.vector_store %arg5[%c0_12, %c0_13], %13 {strides = array<i32>} : memref<2x4xf32, #tpu.memory_space<vmem>>, vector<2x4xf32>,
    return
  }
}

</mosaic_0001>

<bundles_post_ra>
// kernel: classify_forward.5
= control target key start
LH: loop header
LB: loop body
LE: loop exit
PB: predicated region body
PF: predicated region fallthrough
CT: control target
= control target key end

     0   :  { %12 = vsyncpa [#allocation3], 0  ;;  %v267_v1 = vmov 0.0   ;;  %vm268_vm0 = vmmov 0   ;;  %s348_s0 = inlined_call_operand.vmem [shape: f32[2,32], index: 0, kind: input, shape index: {}]   ;;  %s349_s1 = inlined_call_operand.vmem [shape: bf16[32,16], index: 1, kind: input, shape index: {}]   ;;  %s350_s2 = inlined_call_operand.vmem [shape: f32[1,16], index: 2, kind: input, shape index: {}]   ;;  %s351_s3 = inlined_call_operand.vmem [shape: bf16[16,4], index: 3, kind: input, shape index: {}]   ;;  %s352_s4 = inlined_call_operand.vmem [shape: f32[1,4], index: 4, kind: input, shape index: {}]   ;;  %s353_s5 = inlined_call_operand.hbm [shape: f32[2,4], index: 5, kind: output, shape index: {0}]   ;;  %s354_s6 = inlined_call_operand.hbm [shape: f32[2,16], index: 6, kind: output, shape index: {1}]  }
   0x1   :  { %v216_v0 = vld [vmem:[%s349_s1] sm:$0xff]   ;;  %198 = vmatprep.subr.bf16.mxu0 %v267_v1  ;;  %206 = vmatprep.subr.bf16.mxu1 %v267_v1  ;;  %v217_v2 = vld [vmem:[%s349_s1 + $0x8] sm:$0xff]  }
   0x2   :  { %199 = vmatpush3.bf16.msra.mxu0 %v216_v0  ;;  %202 = vmatprep.mubr.msk.bf16.mxu0 %vm268_vm0, %v267_v1  ;;  %v25_v3 = vld [vmem:[%s348_s0] sm:$0x3] }
   0x3   :  { %200 = vmatprep.subr.bf16.mxu0 %v267_v1  ;;  %208 = vmatprep.mubr.msk.bf16.mxu1 %vm268_vm0, %v267_v1 }
   0x4   :  { %13 = vsyncpa [#allocation5], 0  ;;  %v26_v4 = vpack.c.bf16 %v25_v3, %v25_v3  ;;  %vm50_vm1 = vcmask 261120   ;;  %v218_v5 = vld [vmem:[%s351_s3] sm:$0xff]   ;;  %vm94_vm2 = vcmask 123904   ;;  %vm112_vm3 = vcmask 130048  }
   0x5   :  { %207 = vmatpush3.bf16.msra.mxu1 %v218_v5  ;;  %v186_v6 = vld [vmem:[%s350_s2] ss:$0 sm:$0xff]  ;;  %s269_s0 = smov [#allocation4]  }
   0x6   :  { %201 = vmatpush3.bf16.msra.mxu0 %v217_v2  ;;  %s174_s30 = sshll.u32 %s269_s0, 4  ;;  %s175_s30 = int_to_ptr.vmem [resolvable:$true] %s174_s30 }
   0x7   :  { %s219_s7 = scalar_lea.vmem %s175_s30, 32  ;;  %p224_p1 = scmp.lt.s32.totalorder %s175_s30, %s175_s30 }
   0x8   :  { %p220_p0 = scmp.ne.s32.totalorder %s175_s30, %s219_s7  ;;  %p225_p2 = scmp.lt.s32.totalorder %s219_s7, %s219_s7 }
   0x9   :  { %203 = vmatmul.mubr.msk.bf16.vlgmr.msra.gmra.mrb[0].mxu0 %vm50_vm1, %v26_v4 }
   0xa   :  { %p226_p3 = por %p225_p2, %p224_p1 }
   0xc   :  { %p227_p4 = pnand %p226_p3, %p220_p0 }
  0xdc   :  { %v88_v7 = vpop.f32.mrb[0].mxu0 }
  0xdd   :  { %v89_v8 = vadd.f32 %v186_v6, %v88_v7  ;;  %v204_v9 = vpop.f32.mrb[1].mxu0 }
  0xde   :  { %v91_v10 = vpop.f32.mrb[2].mxu0 }
  0xdf   :  { %v96_v11 = vpack.c.bf16 %v89_v8, %v89_v8  ;;  %v205_v12 = vpop.f32.mrb[3].mxu0  ;;  %95 = vst.msk [vmem:[#allocation4] sm:$0x3] %vm94_vm2, %v89_v8 }
  0xe1   :  { %209 = vmatmul.mubr.msk.bf16.vlgmr.msra.gmra.mrb[0].mxu1 %vm112_vm3, %v96_v11 }
  0xe2   :  { %230 = shalt.err (!%p227_p4)
}
  0xe3   :  { %s231_s8 = scalar_lea.hbm %s354_s6, 32 }
  0xe4   :  { %p232_p5 = scmp.ne.s32.totalorder %s354_s6, %s231_s8  ;;  %p235_p6 = scmp.lt.u32.totalorder %s231_s8, %s354_s6 }
  0xe6   :  { %p237_p7 = pnand %p235_p6, %p232_p5 }
  0xe8   :  { %240 = shalt.err (!%p237_p7)
}
  0xe9   :  { %177 = dma.vmem_to_hbm [thread:$0]  %s175_s30, 32, %s354_s6, [#allocation5]   ;;  %v190_v13 = vld [vmem:[%s352_s4] ss:$0 sm:$0xff]  ;;  %vm156_vm4 = vcmask 25600  }
  0xea   :  { %s270_s17 = smov [#allocation2]  }
  0xeb   :  { %s164_s18 = sshll.u32 %s270_s17, 4  ;;  %s165_s18 = int_to_ptr.vmem [resolvable:$true] %s164_s18 }
  0xec   :  { %s241_s19 = scalar_lea.vmem %s165_s18, 32  ;;  %p246_p9 = scmp.lt.s32.totalorder %s165_s18, %s165_s18 }
  0xed   :  { %p242_p8 = scmp.ne.s32.totalorder %s165_s18, %s241_s19  ;;  %p247_p10 = scmp.lt.s32.totalorder %s241_s19, %s241_s19 }
  0xef   :  { %p248_p11 = por %p247_p10, %p246_p9 }
  0xf1   :  { %p249_p12 = pnand %p248_p11, %p242_p8 }
 0x1b4   :  { %v150_v14 = vpop.f32.mrb[0].mxu1 }
 0x1b5   :  { %v151_v15 = vadd.f32 %v190_v13, %v150_v14  ;;  %v210_v16 = vpop.f32.mrb[1].mxu1 }
 0x1b6   :  { %v153_v17 = vpop.f32.mrb[2].mxu1 }
 0x1b7   :  { %v211_v18 = vpop.f32.mrb[3].mxu1  ;;  %157 = vst.msk [vmem:[#allocation2] sm:$0x3] %vm156_vm4, %v151_v15 }
 0x1b8   :  { %252 = shalt.err (!%p249_p12)
}
 0x1b9   :  { %s253_s4 = scalar_lea.hbm %s353_s5, 32 }
 0x1ba   :  { %p254_p13 = scmp.ne.s32.totalorder %s353_s5, %s253_s4  ;;  %p257_p0 = scmp.lt.u32.totalorder %s253_s4, %s353_s5 }
 0x1bc   :  { %p259_p1 = pnand %p257_p0, %p254_p13 }
 0x1be   :  { %262 = shalt.err (!%p259_p1)
}
 0x1bf   :  { %167 = dma.vmem_to_hbm [thread:$0]  %s165_s18, 32, %s353_s5, [#allocation3]  }
 0x1c0   :  { %263 = dma.done.wait [#allocation3], 32  }
 0x1c1   :  { %264 = vsyncadd [#allocation3], 4294967264 }
 0x1c2   :  { %265 = dma.done.wait [#allocation5], 32  }
 0x1c3   :  { %266 = vsyncadd [#allocation5], 4294967264 }
 0x1c4   :  { %184 = vsyncpa [#allocation3], 1 }
 0x1c5   :  { %185 = vsyncpa [#allocation5], 1 }

// kernel: classify_forward.3
= control target key start
LH: loop header
LB: loop body
LE: loop exit
PB: predicated region body
PF: predicated region fallthrough
CT: control target
= control target key end

     0   :  { %s2117_s29 = smov 0   ;;  %s2311_s0 = inlined_call_operand.vmem [shape: f32[2,8,32], index: 0, kind: input, shape index: {}]   ;;  %s2312_s1 = inlined_call_operand.vmem [shape: f32[2,1,8], index: 1, kind: input, shape index: {}]   ;;  %s2313_s2 = inlined_call_operand.vmem [shape: bf16[32,96], index: 2, kind: input, shape index: {}]   ;;  %s2314_s3 = inlined_call_operand.vmem [shape: f32[1,96], index: 3, kind: input, shape index: {}]   ;;  %s2315_s4 = inlined_call_operand.vmem [shape: f32[32,32], index: 4, kind: input, shape index: {}]   ;;  %s2316_s5 = inlined_call_operand.vmem [shape: f32[1,32], index: 5, kind: input, shape index: {}]   ;;  %s2317_s6 = inlined_call_operand.vmem [shape: f32[1,32], index: 6, kind: input, shape index: {}]   ;;  %s2318_s7 = inlined_call_operand.vmem [shape: f32[1,32], index: 7, kind: input, shape index: {}]   ;;  %s2319_s8 = inlined_call_operand.vmem [shape: bf16[32,64], index: 8, kind: input, shape index: {}]   ;;  %s2320_s9 = inlined_call_operand.vmem [shape: f32[1,64], index: 9, kind: input, shape index: {}]   ;;  %s2321_s10 = inlined_call_operand.vmem [shape: bf16[64,32], index: 10, kind: input, shape index: {}]   ;;  %s2322_s11 = inlined_call_operand.vmem [shape: f32[1,32], index: 11, kind: input, shape index: {}]   ;;  %s2323_s12 = inlined_call_operand.vmem [shape: f32[1,32], index: 12, kind: input, shape index: {}]   ;;  %s2324_s13 = inlined_call_operand.vmem [shape: f32[1,32], index: 13, kind: input, shape index: {}]   ;;  %s2325_s14 = inlined_call_operand.vmem [shape: f32[2,8,32], index: 14, kind: output, shape index: {}]  }
   0x1 LB: > { %s1804_s30 = sadd.s32 4294967295, %s2027_s29   ;;  %p1808_p0 = scmp.ge.s32.totalorder %s2027_s29, 1  ;;  %s2027_s29 = sphi %s2117_s29, %s24_s29  }
   0x2   : > { %p419_p1 = scmp.lt.s32.totalorder %s2027_s29, 3 }
   0x4   : > { %p420_p2 = pnand %p1808_p0, %p419_p1 }
   0x5   : > { %v1993_v0 = vld [vmem:[%s2313_s2] sm:$0xff] (!%p420_p2)   ;;  %v2029_v1 = vmov (!%p420_p2), 0.0   ;;  %v1994_v2 = vld [vmem:[%s2313_s2 + $0x8] sm:$0xff] (!%p420_p2)   ;;  %vm2030_vm0 = vmmov (!%p420_p2), 0   ;;  %p466_p3 = scmp.lt.s32.totalorder (!%p420_p2), %s1804_s30, 1  ;;  %vm504_vm1 = vcmask (!%p420_p2), 261120  }
   0x6   : > { %423 = sbr.rel (%p420_p2) target bundleno = 4188 (0x105c), region = 76  ;;  %1884 = vmatprep.subr.bf16.mxu0 (!%p420_p2), %v2029_v1  ;;  %1892 = vmatprep.subr.mxu1 (!%p420_p2), %v2029_v1  ;;  %v1811_v5 = vld [vmem:[%s2314_s3] ss:$0 sm:$0xff] (!%p420_p2)  ;;  %s2031_s25 = smov (!%p420_p2), 64   ;;  %vm555_vm2 = vcmask (!%p420_p2), 64512   ;;  %v549_v48 = vld [vmem:[%s2315_s4 + $0x8] sm:$0xff] (!%p420_p2) }
   0x7   : > { %1885 = vmatpush3.bf16.msra.mxu0 (!%p420_p2), %v1993_v0  ;;  %1888 = vmatprep.mubr.msk.bf16.mxu0 (!%p420_p2), %vm2030_vm0, %v2029_v1  ;;  %s2032_s26 = smov (!%p420_p2), 96   ;;  %s2033_s27 = smov (!%p420_p2), 88   ;;  %v548_v29 = vld [vmem:[%s2315_s4] sm:$0xff] (!%p420_p2)  ;;  %vm1667_vm3 = vcmask (!%p420_p2), 523264  }
   0x8   : > { %1886 = vmatprep.subr.bf16.mxu0 (!%p420_p2), %v2029_v1  ;;  %1894 = vmatprep.mubr.msk.f32.mxu1 (!%p420_p2), %vm2030_vm0, %v2029_v1  ;;  %s2034_s17 = smov (!%p420_p2), 120   ;;  %s2035_s21 = smov (!%p420_p2), 56  }
   0x9   : > { %s2037_s23 = smov (!%p420_p2), 112   ;;  %s2040_s28 = smov (!%p420_p2), 104  }
   0xb   : > { %1887 = vmatpush3.bf16.msra.mxu0 (!%p420_p2), %v1994_v2 }
   0xc   : > { %1917 = vmatprep.subr.mxu0 (!%p420_p2), %v2029_v1 }
   0xd   : > { %s2327_s30 = smov (!%p466_p3, %s1804_s30), 1 }
   0xe   : > { %s1809_s19 = sshll.u32 %s2327_s30, 3  ;;  %s472_s16 = scalar_lea.vmem %s2312_s1, %s2327_s30 }
   0xf   : > { %s469_s22 = scalar_lea.vmem %s2311_s0, %s1809_s19  ;;  %v2173_v14 = vld [vmem:[%s472_s16] ss:$0 sm:$0xff] }
  0x10   : > { %v2147_v3 = vld [vmem:[%s469_s22] sm:$0xff]  ;;  %s2036_s22 = smov 80  }
  0x11   : > { %v480_v4 = vpack.c.bf16 %v2147_v3, %v2147_v3 }
  0x13   : > { %1889 = vmatmul.mubr.msk.bf16.vlgmr.msra.gmra.mrb[0].mxu0 %vm504_vm1, %v480_v4 }
  0x14   : > { %1919 = vmatprep.mubr.msk.f32.mxu0 %vm2030_vm0, %v2029_v1  ;;  %1918 = vmatpush3.msra.mxu0 %v548_v29 }
  0x15   : > { %1927 = vmatprep.subr.mxu0 %v2029_v1 }
  0xe6   : > { %v542_v6 = vpop.f32.mrb[0].mxu0 }
  0xe7   : > { %v2157_v7 = vadd.f32 %v1811_v5, %v542_v6  ;;  %v1890_v8 = vpop.f32.mrb[1].mxu0 }
  0xe8   : > { %v545_v9 = vpop.f32.mrb[2].mxu0 }
  0xe9   : > { %649 = vrot.lane.b32.xlu1 %v2157_v7, %s2031_s25  ;;  %553 = vrot.lane.b32.xlu0 %v2157_v7, %s2032_s26  ;;  %v1891_v10 = vpop.f32.mrb[3].mxu0  ;;  %s2038_s26 = smov 48  }
  0xed   : > { %727 = vrot.lane.b32.xlu1 %v2157_v7, %s2033_s27  ;;  %s2039_s27 = smov 72  }
 0x15b   : > { %v554_v11 = vpop.permute.xlu0 %553  ;;  %v650_v12 = vpop.permute.xlu1 %649 }
 0x15c   : > { %1893 = vmatpush3.xpose.msk.msra.mxu1 %vm555_vm2, %v554_v11  ;;  %v550_v11 = vld [vmem:[%s2315_s4 + $0x10] sm:$0xff] }
 0x15d   : > { %1897 = vmatprep.subr.mxu1 %v2029_v1 }
 0x15f   : > { %1895 = vmatmul.mubr.msk.f32.vlgmr.msra.gmra.mrb[0].mxu1 %vm555_vm2, %v2157_v7  ;;  %v728_v24 = vpop.permute.xlu1 %727 }
 0x160   : > { %1898 = vmatpush3.msra.mxu1 %v650_v12  ;;  %1899 = vmatprep.mubr.msk.f32.mxu1 %vm2030_vm0, %v2029_v1 }
 0x161   : > { %1902 = vmatprep.subr.mxu1 %v2029_v1 }
 0x232   : > { %v626_v13 = vpop.f32.mrb[0].mxu1 }
 0x233   : > { %v630_v15 = vmul.f32 0.35355338, %v626_v13  ;;  %v1896_v16 = vpop.f32.mrb[1].mxu1 }
 0x235   : > { %v637_v17 = vadd.f32 %v2173_v14, %v630_v15 }
 0x237   : > { %v638_v18 = vsel %vm555_vm2, %v637_v17, -inf }
 0x238   : > { %639 = vmax.xlane.f32.xlu0 %v638_v18 }
 0x2c5   : > { %v640_v19 = vpop.xlane.xlu0 %639 }
 0x2c6   : > { %v641_v20 = vsub.f32 %v637_v17, %v640_v19 }
 0x2c8   : > { %v642_v21 = vmul.f32 1.442695, %v641_v20 }
 0x2ca   : > { %2001 = vpow2.f32 %v642_v21 }
 0x2d4   : > { %v2002_v22 = vpop.eup %2001 }
 0x2d5   : > { %v644_v23 = vsel %vm555_vm2, %v2002_v22, 0.0 }
 0x2d6   : > { %645 = vadd.xlane.f32.xlu1 %v644_v23 }
 0x2e7   : > { %725 = vrot.lane.b32.xlu1 %v2157_v7, %s2034_s17  ;;  %s2041_s17 = smov 40  }
 0x363   : > { %v646_v25 = vpop.xlane.xlu1 %645 }
 0x364   : > { %2003 = vrcp.f32 %v646_v25  ;;  %v551_v25 = vld [vmem:[%s2315_s4 + $0x18] sm:$0xff] }
 0x367   : > { %v726_v28 = vpop.permute.xlu1 %725 }
 0x36e   : > { %v2004_v26 = vpop.eup %2003 }
 0x36f   : > { %v648_v27 = vmul.f32 %v2004_v26, %v2002_v22 }
 0x371   : > { %1900 = vmatmul.mubr.msk.f32.vlgmr.msra.gmra.mrb[2].mxu1 %vm555_vm2, %v648_v27 }
 0x372   : > { %1903 = vmatpush3.xpose.msk.msra.mxu1 %vm555_vm2, %v728_v24  ;;  %1904 = vmatprep.mubr.msk.f32.mxu1 %vm2030_vm0, %v2029_v1 }
 0x373   : > { %1907 = vmatprep.subr.mxu1 %v2029_v1 }
 0x375   : > { %1905 = vmatmul.mubr.msk.f32.vlgmr.msra.gmra.mrb[4].mxu1 %vm555_vm2, %v726_v28 }
 0x376   : > { %1909 = vmatprep.mubr.msk.f32.mxu1 %vm2030_vm0, %v2029_v1 }
 0x444   : > { %v721_v30 = vpop.f32.mrb[2].mxu1 }
 0x445   : > { %v1901_v31 = vpop.f32.mrb[3].mxu1  ;;  %1920 = vmatmul.mubr.msk.f32.vlgmr.msra.gmra.mrb[4].mxu0 %vm555_vm2, %v721_v30 }
 0x446   : > { %1929 = vmatprep.mubr.msk.f32.mxu0 %vm2030_vm0, %v2029_v1 }
 0x448   : > { %v799_v32 = vpop.f32.mrb[4].mxu1 }
 0x449   : > { %v803_v33 = vmul.f32 0.35355338, %v799_v32  ;;  %v1906_v34 = vpop.f32.mrb[5].mxu1 }
 0x44a   : > { %v1832_v34 = vld [vmem:[%s2316_s5] ss:$0 sm:$0xff] }
 0x44b   : > { %v804_v35 = vadd.f32 %v2173_v14, %v803_v33 }
 0x44d   : > { %v805_v36 = vsel %vm555_vm2, %v804_v35, -inf }
 0x44e   : > { %806 = vmax.xlane.f32.xlu1 %v805_v36 }
 0x4db   : > { %v807_v37 = vpop.xlane.xlu1 %806 }
 0x4dc   : > { %v808_v38 = vsub.f32 %v804_v35, %v807_v37 }
 0x4de   : > { %v809_v39 = vmul.f32 1.442695, %v808_v38 }
 0x4e0   : > { %2005 = vpow2.f32 %v809_v39 }
 0x4ea   : > { %v2006_v40 = vpop.eup %2005 }
 0x4eb   : > { %v811_v41 = vsel %vm555_vm2, %v2006_v40, 0.0 }
 0x4ec   : > { %812 = vadd.xlane.f32.xlu0 %v811_v41 }
 0x502   : > { %816 = vrot.lane.b32.xlu0 %v2157_v7, %s2035_s21 }
 0x506   : > { %1040 = vrot.lane.b32.xlu0 %v2157_v7, %s2036_s22 }
 0x50a   : > { %1038 = vrot.lane.b32.xlu0 %v2157_v7, %s2037_s23  ;;  %s476_s23 = scalar_lea.vmem %s2325_s14, %s1809_s19 }
 0x518   : > { %v1034_v42 = vpop.f32.mrb[4].mxu0 }
 0x519   : > { %v1921_v43 = vpop.f32.mrb[5].mxu0 }
 0x579   : > { %v813_v44 = vpop.xlane.xlu0 %812 }
 0x57a   : > { %2007 = vrcp.f32 %v813_v44 }
 0x57d   : > { %v817_v45 = vpop.permute.xlu0 %816 }
 0x57e   : > { %1908 = vmatpush3.msra.mxu1 %v817_v45  ;;  %v1995_v45 = vld [vmem:[%s2319_s8] sm:$0xff]  }
 0x57f   : > { %1912 = vmatprep.subr.mxu1 %v2029_v1 }
 0x581   : > { %v1041_v49 = vpop.permute.xlu0 %1040 }
 0x584   : > { %v2008_v46 = vpop.eup %2007 }
 0x585   : > { %v815_v47 = vmul.f32 %v2008_v46, %v2006_v40  ;;  %v1039_v52 = vpop.permute.xlu0 %1038  ;;  %v1996_v46 = vld [vmem:[%s2319_s8 + $0x8] sm:$0xff]  }
 0x587   : > { %1910 = vmatmul.mubr.msk.f32.vlgmr.msra.gmra.mrb[6].mxu1 %vm555_vm2, %v815_v47  ;;  %v1998_v47 = vld [vmem:[%s2321_s10 + $0x8] sm:$0xff]  }
 0x588   : > { %1913 = vmatpush3.msra.mxu1 %v549_v48  ;;  %1914 = vmatprep.mubr.msk.f32.mxu1 %vm2030_vm0, %v2029_v1 }
 0x589   : > { %1922 = vmatprep.subr.mxu1 %v2029_v1 }
 0x65a   : > { %v888_v50 = vpop.f32.mrb[6].mxu1 }
 0x65b   : > { %v1911_v51 = vpop.f32.mrb[7].mxu1  ;;  %1915 = vmatmul.mubr.msk.f32.vlgmr.msra.gmra.mrb[8].mxu1 %vm555_vm2, %v888_v50 }
 0x65c   : > { %1923 = vmatpush3.xpose.msk.msra.mxu1 %vm555_vm2, %v1041_v49  ;;  %1924 = vmatprep.mubr.msk.f32.mxu1 %vm2030_vm0, %v2029_v1 }
 0x65d   : > { %1932 = vmatprep.subr.mxu1 %v2029_v1 }
 0x65f   : > { %1925 = vmatmul.mubr.msk.f32.vlgmr.msra.gmra.mrb[10].mxu1 %vm555_vm2, %v1039_v52  ;;  %v1833_v52 = vld [vmem:[%s2317_s6] ss:$0 sm:$0xff] }
 0x660   : > { %1934 = vmatprep.mubr.msk.f32.mxu1 %vm2030_vm0, %v2029_v1  ;;  %1933 = vmatpush3.msra.mxu1 %v550_v11 }
 0x661   : > { %1942 = vmatprep.subr.mxu1 %v2029_v1 }
 0x72e   : > { %v961_v53 = vpop.f32.mrb[8].mxu1 }
 0x72f   : > { %v1035_v54 = vadd.f32 %v1034_v42, %v961_v53  ;;  %v1916_v55 = vpop.f32.mrb[9].mxu1 }
 0x732   : > { %v1112_v56 = vpop.f32.mrb[10].mxu1 }
 0x733   : > { %v1116_v57 = vmul.f32 0.35355338, %v1112_v56  ;;  %v1926_v58 = vpop.f32.mrb[11].mxu1 }
 0x734   : > { %v1999_v58 = vld [vmem:[%s2321_s10 + $0x10] sm:$0xff]  }
 0x735   : > { %v1117_v59 = vadd.f32 %v2173_v14, %v1116_v57 }
 0x737   : > { %v1118_v60 = vsel %vm555_vm2, %v1117_v59, -inf }
 0x738   : > { %1119 = vmax.xlane.f32.xlu1 %v1118_v60  ;;  %v1835_v60 = vld [vmem:[%s2320_s9] ss:$0 sm:$0xff] }
 0x749   : > { %1129 = vrot.lane.b32.xlu1 %v2157_v7, %s2038_s26 }
 0x74d   : > { %1281 = vrot.lane.b32.xlu1 %v2157_v7, %s2039_s27 }
 0x751   : > { %1279 = vrot.lane.b32.xlu1 %v2157_v7, %s2040_s28 }
 0x7c5   : > { %v1120_v61 = vpop.xlane.xlu1 %1119 }
 0x7c6   : > { %v1121_v62 = vsub.f32 %v1117_v59, %v1120_v61  ;;  %v2000_v59 = vld [vmem:[%s2321_s10 + $0x18] sm:$0xff]  }
 0x7c8   : > { %v1122_v63 = vmul.f32 1.442695, %v1121_v62 }
 0x7c9   : > { %v1130_v0 = vpop.permute.xlu1 %1129 }
 0x7ca   : > { %2009 = vpow2.f32 %v1122_v63  ;;  %1928 = vmatpush3.msra.mxu0 %v1130_v0 }
 0x7cb   : > { %1937 = vmatprep.subr.mxu0 %v2029_v1 }
 0x7cd   : > { %v1282_v8 = vpop.permute.xlu1 %1281 }
 0x7d1   : > { %v1280_v10 = vpop.permute.xlu1 %1279 }
 0x7d4   : > { %v2010_v2 = vpop.eup %2009 }
 0x7d5   : > { %v1124_v4 = vsel %vm555_vm2, %v2010_v2, 0.0 }
 0x7d6   : > { %1125 = vadd.xlane.f32.xlu0 %v1124_v4 }
 0x863   : > { %v1126_v5 = vpop.xlane.xlu0 %1125 }
 0x864   : > { %2011 = vrcp.f32 %v1126_v5 }
 0x86e   : > { %v2012_v6 = vpop.eup %2011 }
 0x86f   : > { %v1128_v9 = vmul.f32 %v2012_v6, %v2010_v2 }
 0x871   : > { %1930 = vmatmul.mubr.msk.f32.vlgmr.msra.gmra.mrb[6].mxu0 %vm555_vm2, %v1128_v9 }
 0x872   : > { %1938 = vmatpush3.xpose.msk.msra.mxu0 %vm555_vm2, %v1282_v8  ;;  %1939 = vmatprep.mubr.msk.f32.mxu0 %vm2030_vm0, %v2029_v1 }
 0x873   : > { %1947 = vmatprep.subr.mxu0 %v2029_v1 }
 0x875   : > { %1940 = vmatmul.mubr.msk.f32.vlgmr.msra.gmra.mrb[8].mxu0 %vm555_vm2, %v1280_v10 }
 0x876   : > { %1949 = vmatprep.mubr.msk.f32.mxu0 %vm2030_vm0, %v2029_v1  ;;  %1948 = vmatpush3.msra.mxu0 %v551_v25 }
 0x877   : > { %1960 = vmatprep.subr.bf16.mxu0 %v2029_v1 }
 0x944   : > { %v1201_v12 = vpop.f32.mrb[6].mxu0 }
 0x945   : > { %v1931_v13 = vpop.f32.mrb[7].mxu0  ;;  %1935 = vmatmul.mubr.msk.f32.vlgmr.msra.gmra.mrb[12].mxu1 %vm555_vm2, %v1201_v12 }
 0x946   : > { %1944 = vmatprep.mubr.msk.f32.mxu1 %vm2030_vm0, %v2029_v1 }
 0x948   : > { %v1353_v15 = vpop.f32.mrb[8].mxu0 }
 0x949   : > { %v1357_v16 = vmul.f32 0.35355338, %v1353_v15  ;;  %v1941_v17 = vpop.f32.mrb[9].mxu0 }
 0x94b   : > { %v1358_v18 = vadd.f32 %v2173_v14, %v1357_v16 }
 0x94d   : > { %v1359_v19 = vsel %vm555_vm2, %v1358_v18, -inf }
 0x94e   : > { %1360 = vmax.xlane.f32.xlu1 %v1359_v19 }
 0x9db   : > { %v1361_v20 = vpop.xlane.xlu1 %1360 }
 0x9dc   : > { %v1362_v21 = vsub.f32 %v1358_v18, %v1361_v20 }
 0x9de   : > { %v1363_v22 = vmul.f32 1.442695, %v1362_v21 }
 0x9e0   : > { %2013 = vpow2.f32 %v1363_v22 }
 0x9ea   : > { %v2014_v23 = vpop.eup %2013 }
 0x9eb   : > { %v1365_v24 = vsel %vm555_vm2, %v2014_v23, 0.0 }
 0x9ec   : > { %1366 = vadd.xlane.f32.xlu0 %v1365_v24  ;;  %v1845_v24 = vld [vmem:[%s2323_s12] ss:$0 sm:$0xff] }
 0xa02   : > { %1370 = vrot.lane.b32.xlu0 %v2157_v7, %s2041_s17 }
 0xa18   : > { %v1274_v14 = vpop.f32.mrb[12].mxu1 }
 0xa19   : > { %v1278_v26 = vadd.f32 %v1274_v14, %v1035_v54  ;;  %v1936_v27 = vpop.f32.mrb[13].mxu1  ;;  %v1834_v54 = vld [vmem:[%s2318_s7] ss:$0 sm:$0xff] }
 0xa1a   : > { %v1846_v14 = vld [vmem:[%s2324_s13] ss:$0 sm:$0xff] }
 0xa79   : > { %v1367_v28 = vpop.xlane.xlu0 %1366 }
 0xa7a   : > { %2015 = vrcp.f32 %v1367_v28 }
 0xa7d   : > { %v1371_v29 = vpop.permute.xlu0 %1370 }
 0xa7e   : > { %1943 = vmatpush3.msra.mxu1 %v1371_v29 }
 0xa7f   : > { %1952 = vmatprep.subr.bf16.mxu1 %v2029_v1 }
 0xa84   : > { %v2016_v30 = vpop.eup %2015 }
 0xa85   : > { %v1369_v31 = vmul.f32 %v2016_v30, %v2014_v23 }
 0xa87   : > { %1945 = vmatmul.mubr.msk.f32.vlgmr.msra.gmra.mrb[14].mxu1 %vm555_vm2, %v1369_v31 }
 0xa88   : > { %1956 = vmatprep.mubr.msk.bf16.mxu1 %vm2030_vm0, %v2029_v1  ;;  %1953 = vmatpush3.bf16.msra.mxu1 %v1995_v45 }
 0xa89   : > { %1954 = vmatprep.subr.bf16.mxu1 %v2029_v1 }
 0xa8c   : > { %1955 = vmatpush3.bf16.msra.mxu1 %v1996_v46 }
 0xb5a   : > { %v1442_v7 = vpop.f32.mrb[14].mxu1 }
 0xb5b   : > { %v1946_v32 = vpop.f32.mrb[15].mxu1  ;;  %1950 = vmatmul.mubr.msk.f32.vlgmr.msra.gmra.mrb[10].mxu0 %vm555_vm2, %v1442_v7 }
 0xb5c   : > { %1968 = vmatprep.mubr.msk.bf16.mxu0 %vm2030_vm0, %v2029_v1 }
 0xc2e   : > { %v1515_v33 = vpop.f32.mrb[10].mxu0 }
 0xc2f   : > { %v1519_v35 = vadd.f32 %v1515_v33, %v1278_v26  ;;  %v1951_v36 = vpop.f32.mrb[11].mxu0 }
 0xc31   : > { %v1527_v37 = vadd.f32 %v1832_v34, %v1519_v35 }
 0xc33   : > { %v1528_v38 = vadd.f32 %v1527_v37, %v2147_v3  ;;  %v1997_v3 = vld [vmem:[%s2321_s10] sm:$0xff]  }
 0xc34   : > { %1961 = vmatpush3.bf16.msra.mxu0 %v1997_v3 }
 0xc35   : > { %v1529_v39 = vsel %vm504_vm1, %v1528_v38, 0.0  ;;  %1962 = vmatprep.subr.bf16.mxu0 %v2029_v1 }
 0xc36   : > { %1530 = vadd.xlane.f32.xlu0 %v1529_v39 }
 0xc38   : > { %1963 = vmatpush3.bf16.msra.mxu0 %v1998_v47 }
 0xc39   : > { %1964 = vmatprep.subr.bf16.mxu0 %v2029_v1 }
 0xc3c   : > { %1965 = vmatpush3.bf16.msra.mxu0 %v1999_v58 }
 0xc3d   : > { %1966 = vmatprep.subr.bf16.mxu0 %v2029_v1  ;;  %v1839_v1 = vld [vmem:[%s2322_s11] ss:$0 sm:$0xff] }
 0xc40   : > { %1967 = vmatpush3.bf16.msra.mxu0 %v2000_v59 }
 0xcc3   : > { %v1531_v40 = vpop.xlane.xlu0 %1530 }
 0xcc4   : > { %v1533_v41 = vmul.f32 0.03125, %v1531_v40 }
 0xcc6   : > { %v1534_v42 = vsub.f32 %v1528_v38, %v1533_v41 }
 0xcc8   : > { %v1535_v43 = vmul.f32 %v1534_v42, %v1534_v42 }
 0xcca   : > { %v1536_v44 = vsel %vm504_vm1, %v1535_v43, 0.0 }
 0xccb   : > { %1537 = vadd.xlane.f32.xlu1 %v1536_v44 }
 0xd58   : > { %v1538_v48 = vpop.xlane.xlu1 %1537 }
 0xd59   : > { %v1539_v49 = vmul.f32 0.03125, %v1538_v48 }
 0xd5b   : > { %v1540_v50 = vadd.f32 1e-12, %v1539_v49 }
 0xd5d   : > { %2017 = vrsqrt.f32 %v1540_v50 }
 0xd67   : > { %v2018_v51 = vpop.eup %2017 }
 0xd68   : > { %v1542_v53 = vmul.f32 %v2018_v51, %v1534_v42 }
 0xd6a   : > { %v1550_v55 = vmul.f32 %v1833_v52, %v1542_v53 }
 0xd6c   : > { %v1558_v56 = vadd.f32 %v1834_v54, %v1550_v55 }
 0xd6e   : > { %v1559_v57 = vpack.c.bf16 %v1558_v56, %v1558_v56 }
 0xd70   : > { %1957 = vmatmul.mubr.msk.bf16.vlgmr.msra.gmra.mrb[16].mxu1 %vm504_vm1, %v1559_v57 }
 0xe43   : > { %v1620_v61 = vpop.f32.mrb[16].mxu1 }
 0xe44   : > { %v1621_v62 = vadd.f32 %v1835_v60, %v1620_v61  ;;  %v1958_v63 = vpop.f32.mrb[17].mxu1 }
 0xe45   : > { %v1623_v0 = vpop.f32.mrb[18].mxu1 }
 0xe46   : > { %v1626_v2 = vmax.f32 %v1621_v62, 0.0  ;;  %v1959_v4 = vpop.f32.mrb[19].mxu1 }
 0xe48   : > { %v1627_v5 = vpack.c.bf16 %v1626_v2, %v1626_v2 }
 0xe4a   : > { %1969 = vmatmul.mubr.msk.bf16.vlgmr.msra.gmra.mrb[12].mxu0 %vm1667_vm3, %v1627_v5 }
 0xf1d   : > { %v1705_v6 = vpop.f32.mrb[12].mxu0 }
 0xf1e   : > { %v1706_v8 = vadd.f32 %v1839_v1, %v1705_v6  ;;  %v1970_v9 = vpop.f32.mrb[13].mxu0 }
 0xf1f   : > { %v1708_v10 = vpop.f32.mrb[14].mxu0 }
 0xf20   : > { %v1971_v11 = vpop.f32.mrb[15].mxu0  ;;  %v1711_v12 = vadd.f32 %v1706_v8, %v1558_v56 }
 0xf22   : > { %v1712_v13 = vsel %vm504_vm1, %v1711_v12, 0.0 }
 0xf23   : > { %1713 = vadd.xlane.f32.xlu1 %v1712_v13 }
 0xfb0   : > { %v1714_v15 = vpop.xlane.xlu1 %1713 }
 0xfb1   : > { %v1715_v16 = vmul.f32 0.03125, %v1714_v15 }
 0xfb3   : > { %v1716_v17 = vsub.f32 %v1711_v12, %v1715_v16 }
 0xfb5   : > { %v1717_v18 = vmul.f32 %v1716_v17, %v1716_v17 }
 0xfb7   : > { %v1718_v19 = vsel %vm504_vm1, %v1717_v18, 0.0 }
 0xfb8   : > { %1719 = vadd.xlane.f32.xlu1 %v1718_v19 }
0x1045   : > { %v1720_v20 = vpop.xlane.xlu1 %1719 }
0x1046   : > { %v1721_v21 = vmul.f32 0.03125, %v1720_v20 }
0x1048   : > { %v1722_v22 = vadd.f32 1e-12, %v1721_v21 }
0x104a   : > { %2019 = vrsqrt.f32 %v1722_v22 }
0x1054   : > { %v2020_v23 = vpop.eup %2019 }
0x1055   : > { %v1724_v25 = vmul.f32 %v2020_v23, %v1716_v17 }
0x1057   : > { %v1732_v26 = vmul.f32 %v1845_v24, %v1724_v25 }
0x1059   : > { %v1740_v27 = vadd.f32 %v1846_v14, %v1732_v26 }
0x105b   : > { %1741 = vst.msk [vmem:[%s476_s23] sm:$0xff] %vm504_vm1, %v1740_v27 }
0x105c PF: > { %s24_s29 = sadd.s32 1, %s2027_s29  }
0x105d   : > { %p21_p4 = scmp.ge.s32.totalorder %s24_s29, 4  }
0x105f   :  { %23 = sbr.rel (!%p21_p4) target bundleno = 1 (0x1), region = 109 }

</bundles_post_ra>
